<compile_context>
chip_gen: v7x
topology: tpu7x:2x2x1
jax: 0.10.0
libtpu: 0.0.40
codegen_flags: <defaults>
</compile_context>

<pallas_src>
import functools

import jax
import jax.numpy as jnp
from jax.experimental import pallas as pl
from jax.experimental.pallas import tpu as pltpu


def _round_up(x, m):
    return ((x + m - 1) // m) * m


def _choose_tile_b(batch, max_tile_b):
    """Batch tile: multiple of 16 (bf16 sublane packing), low padding waste,
    >=2 grid steps when possible (v7x megacore)."""
    if batch <= 16:
        return batch                               # block == full dim, single step
    n_steps = max(pl.cdiv(batch, max_tile_b), 2)   # at least 2 steps -> both v7x TCs busy
    tile = _round_up(pl.cdiv(batch, n_steps), 16)
    return min(tile, _round_up(batch, 16))


# --------------------------------------------------------------------------- kernels

def _coi_kernel_fused(obs_ref, goal_ref, act_ref,
                      w1o_ref, w1g_ref, w1a_ref, b1_ref,
                      w2_ref, b2_ref, w3_ref, b3_ref,
                      out_ref, *, d_act):
    """Fully fused policy+Q path (valid when 2H fits one MXU output tile)."""
    # Layer 1: policy || q fused along the output axis; K-split over the three
    # concat pieces (no lane concat, no wrapper concat).  Policy half of the
    # goal/act weights is exactly zero, so policy == relu(obs @ pw1 + pb1).
    y = (jnp.dot(obs_ref[...], w1o_ref[...], preferred_element_type=jnp.float32)
         + jnp.dot(goal_ref[...], w1g_ref[...], preferred_element_type=jnp.float32)
         + jnp.dot(act_ref[...], w1a_ref[...], preferred_element_type=jnp.float32)
         + b1_ref[...])
    y = jnp.maximum(y, 0.0)                              # f32 elementwise (v5e-safe)

    # Layer 2: block-diagonal [[pw2, 0], [0, qw2]] on the fused hidden.
    y = jnp.dot(y.astype(jnp.bfloat16), w2_ref[...],
                preferred_element_type=jnp.float32) + b2_ref[...]
    y = jnp.maximum(y, 0.0)

    # Layer 3: cols [0:d_act] = policy head, col d_act = q head, rest zero-padded.
    y = jnp.dot(y.astype(jnp.bfloat16), w3_ref[...],
                preferred_element_type=jnp.float32) + b3_ref[...]
    col = jax.lax.broadcasted_iota(jnp.int32, y.shape, 1)
    out_ref[...] = jnp.where(col == d_act, y, jnp.tanh(y)).astype(out_ref.dtype)


def _coi_kernel_split(obs_ref, goal_ref, act_ref,
                      pw1_ref, pb1_ref, pw2_ref, pb2_ref, pw3_ref, pb3_ref,
                      qw1o_ref, qw1g_ref, qw1a_ref, qb1_ref,
                      qw2_ref, qb2_ref, qw3_ref, qb3_ref,
                      out_ref, *, d_act):
    """Split path for large hidden (2H > one MXU output tile): fusing would double
    K passes and require a lane slice of the hidden, so branches stay separate."""
    obs = obs_ref[...]

    # Policy MLP on the (identity-)encoded observation.
    h = jnp.maximum(jnp.dot(obs, pw1_ref[...],
                            preferred_element_type=jnp.float32) + pb1_ref[...], 0.0)
    h = jnp.maximum(jnp.dot(h.astype(jnp.bfloat16), pw2_ref[...],
                            preferred_element_type=jnp.float32) + pb2_ref[...], 0.0)
    pi = jnp.tanh(jnp.dot(h.astype(jnp.bfloat16), pw3_ref[...],
                          preferred_element_type=jnp.float32) + pb3_ref[...])

    # Q MLP on concat([obs, goal, act], -1), computed as K-split matmuls.
    z = (jnp.dot(obs, qw1o_ref[...], preferred_element_type=jnp.float32)
         + jnp.dot(goal_ref[...], qw1g_ref[...], preferred_element_type=jnp.float32)
         + jnp.dot(act_ref[...], qw1a_ref[...], preferred_element_type=jnp.float32)
         + qb1_ref[...])
    z = jnp.maximum(z, 0.0)
    z = jnp.maximum(jnp.dot(z.astype(jnp.bfloat16), qw2_ref[...],
                            preferred_element_type=jnp.float32) + qb2_ref[...], 0.0)
    # N=1 head as VPU mul + cross-lane reduce (qw3 is a (1, H) row).
    q = jnp.sum(z * qw3_ref[...], axis=-1, keepdims=True) + qb3_ref[...]

    col = jax.lax.broadcasted_iota(jnp.int32, pi.shape, 1)
    out_ref[...] = jnp.where(col == d_act, q, pi).astype(out_ref.dtype)


# ---------------------------------------------------------------------- weight prep

def _prepare_params_fused(params, d_obs, d_goal, d_act, out_pad):
    f32, bf16 = jnp.float32, jnp.bfloat16
    H = params["pw2"].shape[0]
    H2 = 2 * H
    # Layer 1: [policy | q] fused along output axis, split over concat pieces (K-split).
    w1o = jnp.concatenate([params["pw1"], params["qw1_obs"]], axis=1).astype(bf16)
    w1g = jnp.concatenate([jnp.zeros((d_goal, H), f32), params["qw1_goal"]], axis=1).astype(bf16)
    w1a = jnp.concatenate([jnp.zeros((d_act, H), f32), params["qw1_act"]], axis=1).astype(bf16)
    b1 = jnp.concatenate([params["pb1"], params["qb1"]], axis=1).astype(f32)
    # Layer 2: block-diagonal [[pw2, 0], [0, qw2]].
    w2 = (jnp.zeros((H2, H2), f32)
          .at[:H, :H].set(params["pw2"])
          .at[H:, H:].set(params["qw2"]).astype(bf16))
    b2 = jnp.concatenate([params["pb2"], params["qb2"]], axis=1).astype(f32)
    # Layer 3: policy head in cols [0:d_act], q head appended in col d_act.
    w3 = (jnp.zeros((H2, out_pad), f32)
          .at[:H, :d_act].set(params["pw3"])
          .at[H:, d_act].set(params["qw3"][:, 0]).astype(bf16))
    b3 = (jnp.zeros((1, out_pad), f32)
          .at[:, :d_act].set(params["pb3"])
          .at[:, d_act].set(params["qb3"][:, 0]))
    return (w1o, w1g, w1a, b1, w2, b2, w3, b3)


def _prepare_params_split(params, d_obs, d_goal, d_act, out_pad):
    f32, bf16 = jnp.float32, jnp.bfloat16
    H = params["pw2"].shape[0]
    pw3 = jnp.zeros((H, out_pad), f32).at[:, :d_act].set(params["pw3"]).astype(bf16)
    pb3 = jnp.zeros((1, out_pad), f32).at[:, :d_act].set(params["pb3"])
    return (params["pw1"].astype(bf16), params["pb1"].astype(f32),
            params["pw2"].astype(bf16), params["pb2"].astype(f32),
            pw3, pb3,
            params["qw1_obs"].astype(bf16), params["qw1_goal"].astype(bf16),
            params["qw1_act"].astype(bf16), params["qb1"].astype(f32),
            params["qw2"].astype(bf16), params["qb2"].astype(f32),
            params["qw3"].reshape(1, H).astype(f32),
            params["qb3"].reshape(1, 1).astype(f32))


# --------------------------------------------------------------------------- wrapper

def contrastive_oi_forward(obs, goal, act, params, *, max_tile_b=512):
    """pi = policy(format_policy_obs(obs)),  q = qfunc(*format_qfunc_input(obs, act, goal))."""
    B, d_obs = obs.shape
    d_goal = goal.shape[1]
    d_act = act.shape[1]
    hidden = params["pw2"].shape[0]
    out_pad = 128 * pl.cdiv(d_act + 1, 128)

    # Activations are only ever consumed as bf16 MXU operands -> feed them as bf16
    # (no-op if the caller already provides bf16); halves per-step activation DMA.
    obs = obs.astype(jnp.bfloat16)
    goal = goal.astype(jnp.bfloat16)
    act = act.astype(jnp.bfloat16)

    tile_b = _choose_tile_b(B, max_tile_b)
    grid = (pl.cdiv(B, tile_b),)        # ragged final block handled by Pallas (no jnp.pad)

    fuse = (2 * hidden) <= 256          # 2H fits one MXU output tile (v6e/v7x; also <=128 ok on v5e)
    if fuse:
        weight_args = _prepare_params_fused(params, d_obs, d_goal, d_act, out_pad)
        kernel = functools.partial(_coi_kernel_fused, d_act=d_act)
    else:
        weight_args = _prepare_params_split(params, d_obs, d_goal, d_act, out_pad)
        kernel = functools.partial(_coi_kernel_split, d_act=d_act)

    act_specs = [pl.BlockSpec((tile_b, d_obs), lambda i: (i, 0)),
                 pl.BlockSpec((tile_b, d_goal), lambda i: (i, 0)),
                 pl.BlockSpec((tile_b, d_act), lambda i: (i, 0))]
    out_spec = pl.BlockSpec((tile_b, out_pad), lambda i: (i, 0))

    # Explicit VMEM limit with headroom (weights worst-case double-buffered).
    wbytes = sum(int(w.size) * w.dtype.itemsize for w in weight_args)
    act_bytes = 2 * 2 * tile_b * (d_obs + d_goal + d_act)   # bf16, double-buffered
    out_bytes = 2 * 4 * tile_b * out_pad                    # f32, double-buffered
    vmem_limit = int(min(48 * 1024 * 1024,
                         max(16 * 1024 * 1024, 2 * (2 * wbytes + act_bytes + out_bytes))))

    def build(weight_pipeline_mode):
        wspecs = []
        for w in weight_args:
            if weight_pipeline_mode is None:
                wspecs.append(pl.BlockSpec(w.shape, lambda i: (0, 0)))
            else:
                wspecs.append(pl.BlockSpec(w.shape, lambda i: (0, 0),
                                           pipeline_mode=weight_pipeline_mode))
        return pl.pallas_call(
            kernel,
            out_shape=jax.ShapeDtypeStruct((B, out_pad), jnp.float32),
            grid=grid,
            in_specs=act_specs + wspecs,
            out_specs=out_spec,
            compiler_params=pltpu.CompilerParams(
                dimension_semantics=("parallel",),
                vmem_limit_bytes=vmem_limit))

    try:
        # Weight blocks never change across grid steps -> single-buffer them.
        slab = build(pl.Buffered(1))(obs, goal, act, *weight_args)
    except Exception:
        # TODO(synk): pipeline_mode=pl.Buffered(1) unsupported on this jax version;
        # fall back to default (double-buffered) weight pipelining.
        slab = build(None)(obs, goal, act, *weight_args)

    pi = slab[:, :d_act]
    q = slab[:, d_act:d_act + 1]
    return pi, q


# -------------------------------------------------------------------- params & reference

def _linear_init(key, d_in, d_out):
    """Deterministic PyTorch-style (Kaiming-uniform-ish) linear init; W stored (in, out)."""
    kw, kb = jax.random.split(key)
    bound = 1.0 / jnp.sqrt(jnp.float32(d_in))
    w = jax.random.uniform(kw, (d_in, d_out), jnp.float32, -bound, bound)
    b = jax.random.uniform(kb, (1, d_out), jnp.float32, -bound, bound)
    return w, b


def init_params(key, d_obs, d_goal, d_act, hidden):
    keys = jax.random.split(key, 6)
    pw1, pb1 = _linear_init(keys[0], d_obs, hidden)                      # policy MLP
    pw2, pb2 = _linear_init(keys[1], hidden, hidden)
    pw3, pb3 = _linear_init(keys[2], hidden, d_act)
    qw1, qb1 = _linear_init(keys[3], d_obs + d_goal + d_act, hidden)     # qfunc MLP
    qw2, qb2 = _linear_init(keys[4], hidden, hidden)
    qw3, qb3 = _linear_init(keys[5], hidden, 1)
    return {
        "pw1": pw1, "pb1": pb1, "pw2": pw2, "pb2": pb2, "pw3": pw3, "pb3": pb3,
        "qw1_obs": qw1[:d_obs], "qw1_goal": qw1[d_obs:d_obs + d_goal],
        "qw1_act": qw1[d_obs + d_goal:], "qb1": qb1,
        "qw2": qw2, "qb2": qb2, "qw3": qw3, "qb3": qb3,
    }


def _reference(obs, goal, act, params):
    """Pure-JAX reference with the same bf16 operand rounding as the kernel."""
    def mm(a, w, b):
        return jnp.dot(a.astype(jnp.bfloat16), w.astype(jnp.bfloat16),
                       preferred_element_type=jnp.float32) + b

    h = jnp.maximum(mm(obs, params["pw1"], params["pb1"]), 0.0)
    h = jnp.maximum(mm(h, params["pw2"], params["pb2"]), 0.0)
    pi = jnp.tanh(mm(h, params["pw3"], params["pb3"]))

    xq = jnp.concatenate([obs.astype(jnp.float32), goal.astype(jnp.float32),
                          act.astype(jnp.float32)], axis=-1)
    qw1 = jnp.concatenate(
        [params["qw1_obs"], params["qw1_goal"], params["qw1_act"]], axis=0)
    z = jnp.maximum(mm(xq, qw1, params["qb1"]), 0.0)
    z = jnp.maximum(mm(z, params["qw2"], params["qb2"]), 0.0)
    q = mm(z, params["qw3"], params["qb3"])
    return pi, q


if __name__ == "__main__":
    # TODO(synk): the container's own forward() raises NotImplementedError in the
    # reference; we implement the component forwards (policy on format_policy_obs,
    # qfunc on format_qfunc_input) with encoder_class=None (nn.Identity encoders).
    root = jax.random.PRNGKey(0)

    # --- test 1: small shapes, fused (2H <= 256) path, single grid step ---
    B, D_OBS, D_GOAL, D_ACT, HID = 8, 16, 16, 8, 32
    k_obs, k_goal, k_act, k_params, root = jax.random.split(root, 5)
    obs = jax.random.normal(k_obs, (B, D_OBS), jnp.float32).astype(jnp.bfloat16)
    desired_goal = jax.random.normal(k_goal, (B, D_GOAL), jnp.float32).astype(jnp.bfloat16)
    action = jax.random.normal(k_act, (B, D_ACT), jnp.float32).astype(jnp.bfloat16)
    params = init_params(k_params, D_OBS, D_GOAL, D_ACT, HID)

    pi, q = contrastive_oi_forward(obs, desired_goal, action, params)
    jax.block_until_ready((pi, q))
    assert pi.shape == (B, D_ACT) and q.shape == (B, 1)
    pi_ref, q_ref = _reference(obs, desired_goal, action, params)
    assert jnp.allclose(pi, pi_ref, atol=1e-2, rtol=1e-2)
    assert jnp.allclose(q, q_ref, atol=1e-2, rtol=1e-2)

    # --- test 2: larger batch (multi-step grid, ragged tail), split (2H > 256) path ---
    B, D_OBS, D_GOAL, D_ACT, HID = 300, 24, 24, 10, 192
    k_obs, k_goal, k_act, k_params, root = jax.random.split(root, 5)
    obs = jax.random.normal(k_obs, (B, D_OBS), jnp.float32).astype(jnp.bfloat16)
    desired_goal = jax.random.normal(k_goal, (B, D_GOAL), jnp.float32).astype(jnp.bfloat16)
    action = jax.random.normal(k_act, (B, D_ACT), jnp.float32).astype(jnp.bfloat16)
    params = init_params(k_params, D_OBS, D_GOAL, D_ACT, HID)

    pi, q = contrastive_oi_forward(obs, desired_goal, action, params, max_tile_b=128)
    jax.block_until_ready((pi, q))
    assert pi.shape == (B, D_ACT) and q.shape == (B, 1)
    pi_ref, q_ref = _reference(obs, desired_goal, action, params)
    assert jnp.allclose(pi, pi_ref, atol=1e-2, rtol=1e-2)
    assert jnp.allclose(q, q_ref, atol=1e-2, rtol=1e-2)

    print("KERNEL_OK")
</pallas_src>

<mosaic_0001>
module attributes {stable_mosaic.version = 11 : i64} {
  func.func @_coi_kernel_fused(%arg0: i32, %arg1: memref<8x16xbf16, #tpu.memory_space<vmem>>, %arg2: memref<8x16xbf16, #tpu.memory_space<vmem>>, %arg3: memref<8x8xbf16, #tpu.memory_space<vmem>>, %arg4: memref<16x64xbf16, #tpu.memory_space<vmem>>, %arg5: memref<16x64xbf16, #tpu.memory_space<vmem>>, %arg6: memref<8x64xbf16, #tpu.memory_space<vmem>>, %arg7: memref<1x64xf32, #tpu.memory_space<vmem>>, %arg8: memref<64x64xbf16, #tpu.memory_space<vmem>>, %arg9: memref<1x64xf32, #tpu.memory_space<vmem>>, %arg10: memref<64x128xbf16, #tpu.memory_space<vmem>>, %arg11: memref<1x128xf32, #tpu.memory_space<vmem>>, %arg12: memref<8x128xf32, #tpu.memory_space<vmem>>) attributes {dimension_semantics = [#tpu.dimension_semantics<parallel>], iteration_bounds = array<i64: 1>, scalar_prefetch = 0 : i64, scratch_operands = 0 : i64, tpu.core_type = #tpu.core_type<tc>, window_params = [{transform_indices = @transform_0, window_bounds = array<i64: 8, 16>}, {transform_indices = @transform_1, window_bounds = array<i64: 8, 16>}, {transform_indices = @transform_2, window_bounds = array<i64: 8, 8>}, {pipeline_mode = #tpu.pipeline_mode<synchronous>, transform_indices = @transform_3, window_bounds = array<i64: 16, 64>}, {pipeline_mode = #tpu.pipeline_mode<synchronous>, transform_indices = @transform_4, window_bounds = array<i64: 16, 64>}, {pipeline_mode = #tpu.pipeline_mode<synchronous>, transform_indices = @transform_5, window_bounds = array<i64: 8, 64>}, {pipeline_mode = #tpu.pipeline_mode<synchronous>, transform_indices = @transform_6, window_bounds = array<i64: 1, 64>}, {pipeline_mode = #tpu.pipeline_mode<synchronous>, transform_indices = @transform_7, window_bounds = array<i64: 64, 64>}, {pipeline_mode = #tpu.pipeline_mode<synchronous>, transform_indices = @transform_8, window_bounds = array<i64: 1, 64>}, {pipeline_mode = #tpu.pipeline_mode<synchronous>, transform_indices = @transform_9, window_bounds = array<i64: 64, 128>}, {pipeline_mode = #tpu.pipeline_mode<synchronous>, transform_indices = @transform_10, window_bounds = array<i64: 1, 128>}, {transform_indices = @transform_11, window_bounds = array<i64: 8, 128>}]} {
    %c0 = arith.constant 0 : index
    %c0_0 = arith.constant 0 : index
    %0 = vector.load %arg1[%c0, %c0_0] : memref<8x16xbf16, #tpu.memory_space<vmem>>, vector<8x16xbf16>
    %c0_1 = arith.constant 0 : index
    %c0_2 = arith.constant 0 : index
    %1 = vector.load %arg4[%c0_1, %c0_2] : memref<16x64xbf16, #tpu.memory_space<vmem>>, vector<16x64xbf16>
    %cst = arith.constant dense<0.000000e+00> : vector<8x64xf32>
    %2 = tpu.matmul %0, %1, %cst {dimension_numbers = #tpu.dot_dimension_numbers<[1], [0], [0], [1], [0, 0, 1, 1], [], []>} : vector<8x16xbf16>, vector<16x64xbf16>, vector<8x64xf32> -> vector<8x64xf32>
    %c0_3 = arith.constant 0 : index
    %c0_4 = arith.constant 0 : index
    %3 = vector.load %arg2[%c0_3, %c0_4] : memref<8x16xbf16, #tpu.memory_space<vmem>>, vector<8x16xbf16>
    %c0_5 = arith.constant 0 : index
    %c0_6 = arith.constant 0 : index
    %4 = vector.load %arg5[%c0_5, %c0_6] : memref<16x64xbf16, #tpu.memory_space<vmem>>, vector<16x64xbf16>
    %cst_7 = arith.constant dense<0.000000e+00> : vector<8x64xf32>
    %5 = tpu.matmul %3, %4, %cst_7 {dimension_numbers = #tpu.dot_dimension_numbers<[1], [0], [0], [1], [0, 0, 1, 1], [], []>} : vector<8x16xbf16>, vector<16x64xbf16>, vector<8x64xf32> -> vector<8x64xf32>
    %6 = arith.addf %2, %5 : vector<8x64xf32>
    %c0_8 = arith.constant 0 : index
    %c0_9 = arith.constant 0 : index
    %7 = vector.load %arg3[%c0_8, %c0_9] : memref<8x8xbf16, #tpu.memory_space<vmem>>, vector<8x8xbf16>
    %c0_10 = arith.constant 0 : index
    %c0_11 = arith.constant 0 : index
    %8 = vector.load %arg6[%c0_10, %c0_11] : memref<8x64xbf16, #tpu.memory_space<vmem>>, vector<8x64xbf16>
    %cst_12 = arith.constant dense<0.000000e+00> : vector<8x64xf32>
    %9 = tpu.matmul %7, %8, %cst_12 {dimension_numbers = #tpu.dot_dimension_numbers<[1], [0], [0], [1], [0, 0, 1, 1], [], []>} : vector<8x8xbf16>, vector<8x64xbf16>, vector<8x64xf32> -> vector<8x64xf32>
    %10 = arith.addf %6, %9 : vector<8x64xf32>
    %c0_13 = arith.constant 0 : index
    %c0_14 = arith.constant 0 : index
    %11 = vector.load %arg7[%c0_13, %c0_14] : memref<1x64xf32, #tpu.memory_space<vmem>>, vector<1x64xf32>
    %12 = vector.broadcast %11 : vector<1x64xf32> to vector<8x64xf32>
    %13 = arith.addf %10, %12 : vector<8x64xf32>
    %cst_15 = arith.constant 0.000000e+00 : f32
    %14 = vector.broadcast %cst_15 : f32 to vector<8x64xf32>
    %15 = arith.maximumf %13, %14 : vector<8x64xf32>
    %16 = arith.truncf %15 : vector<8x64xf32> to vector<8x64xbf16>
    %c0_16 = arith.constant 0 : index
    %c0_17 = arith.constant 0 : index
    %17 = vector.load %arg8[%c0_16, %c0_17] : memref<64x64xbf16, #tpu.memory_space<vmem>>, vector<64x64xbf16>
    %cst_18 = arith.constant dense<0.000000e+00> : vector<8x64xf32>
    %18 = tpu.matmul %16, %17, %cst_18 {dimension_numbers = #tpu.dot_dimension_numbers<[1], [0], [0], [1], [0, 0, 1, 1], [], []>} : vector<8x64xbf16>, vector<64x64xbf16>, vector<8x64xf32> -> vector<8x64xf32>
    %c0_19 = arith.constant 0 : index
    %c0_20 = arith.constant 0 : index
    %19 = vector.load %arg9[%c0_19, %c0_20] : memref<1x64xf32, #tpu.memory_space<vmem>>, vector<1x64xf32>
    %20 = vector.broadcast %19 : vector<1x64xf32> to vector<8x64xf32>
    %21 = arith.addf %18, %20 : vector<8x64xf32>
    %cst_21 = arith.constant 0.000000e+00 : f32
    %22 = vector.broadcast %cst_21 : f32 to vector<8x64xf32>
    %23 = arith.maximumf %21, %22 : vector<8x64xf32>
    %24 = arith.truncf %23 : vector<8x64xf32> to vector<8x64xbf16>
    %c0_22 = arith.constant 0 : index
    %c0_23 = arith.constant 0 : index
    %25 = vector.load %arg10[%c0_22, %c0_23] : memref<64x128xbf16, #tpu.memory_space<vmem>>, vector<64x128xbf16>
    %cst_24 = arith.constant dense<0.000000e+00> : vector<8x128xf32>
    %26 = tpu.matmul %24, %25, %cst_24 {dimension_numbers = #tpu.dot_dimension_numbers<[1], [0], [0], [1], [0, 0, 1, 1], [], []>} : vector<8x64xbf16>, vector<64x128xbf16>, vector<8x128xf32> -> vector<8x128xf32>
    %c0_25 = arith.constant 0 : index
    %c0_26 = arith.constant 0 : index
    %27 = vector.load %arg11[%c0_25, %c0_26] : memref<1x128xf32, #tpu.memory_space<vmem>>, vector<1x128xf32>
    %28 = vector.broadcast %27 : vector<1x128xf32> to vector<8x128xf32>
    %29 = arith.addf %26, %28 : vector<8x128xf32>
    %30 = tpu.iota {dimensions = array<i32: 1>} : vector<8x128xi32>
    %c8_i32 = arith.constant 8 : i32
    %31 = vector.broadcast %c8_i32 : i32 to vector<8x128xi32>
    %32 = arith.cmpi eq, %30, %31 : vector<8x128xi32>
    %33 = math.tanh %29 : vector<8x128xf32>
    %34 = arith.select %32, %29, %33 : vector<8x128xi1>, vector<8x128xf32>
    %c0_27 = arith.constant 0 : index
    %c0_28 = arith.constant 0 : index
    %35 = vector.load %arg12[%c0_27, %c0_28] : memref<8x128xf32, #tpu.memory_space<vmem>>, vector<8x128xf32>
    tpu.vector_store %arg12[%c0_27, %c0_28], %34 {strides = array<i32>} : memref<8x128xf32, #tpu.memory_space<vmem>>, vector<8x128xf32>,
    return
  }
  func.func @transform_0(%arg0: i32) -> (i32, i32) {
    %c0_i32 = arith.constant 0 : i32
    %c0_i32_0 = arith.constant 0 : i32
    return %arg0, %c0_i32 : i32, i32
  }
  func.func @transform_1(%arg0: i32) -> (i32, i32) {
    %c0_i32 = arith.constant 0 : i32
    %c0_i32_0 = arith.constant 0 : i32
    return %arg0, %c0_i32 : i32, i32
  }
  func.func @transform_2(%arg0: i32) -> (i32, i32) {
    %c0_i32 = arith.constant 0 : i32
    %c0_i32_0 = arith.constant 0 : i32
    return %arg0, %c0_i32 : i32, i32
  }
  func.func @transform_3(%arg0: i32) -> (i32, i32) {
    %c0_i32 = arith.constant 0 : i32
    %c0_i32_0 = arith.constant 0 : i32
    %c0_i32_1 = arith.constant 0 : i32
    return %c0_i32, %c0_i32_0 : i32, i32
  }
  func.func @transform_4(%arg0: i32) -> (i32, i32) {
    %c0_i32 = arith.constant 0 : i32
    %c0_i32_0 = arith.constant 0 : i32
    %c0_i32_1 = arith.constant 0 : i32
    return %c0_i32, %c0_i32_0 : i32, i32
  }
  func.func @transform_5(%arg0: i32) -> (i32, i32) {
    %c0_i32 = arith.constant 0 : i32
    %c0_i32_0 = arith.constant 0 : i32
    %c0_i32_1 = arith.constant 0 : i32
    return %c0_i32, %c0_i32_0 : i32, i32
  }
  func.func @transform_6(%arg0: i32) -> (i32, i32) {
    %c0_i32 = arith.constant 0 : i32
    %c0_i32_0 = arith.constant 0 : i32
    %c0_i32_1 = arith.constant 0 : i32
    return %c0_i32, %c0_i32_0 : i32, i32
  }
  func.func @transform_7(%arg0: i32) -> (i32, i32) {
    %c0_i32 = arith.constant 0 : i32
    %c0_i32_0 = arith.constant 0 : i32
    %c0_i32_1 = arith.constant 0 : i32
    return %c0_i32, %c0_i32_0 : i32, i32
  }
  func.func @transform_8(%arg0: i32) -> (i32, i32) {
    %c0_i32 = arith.constant 0 : i32
    %c0_i32_0 = arith.constant 0 : i32
    %c0_i32_1 = arith.constant 0 : i32
    return %c0_i32, %c0_i32_0 : i32, i32
  }
  func.func @transform_9(%arg0: i32) -> (i32, i32) {
    %c0_i32 = arith.constant 0 : i32
    %c0_i32_0 = arith.constant 0 : i32
    %c0_i32_1 = arith.constant 0 : i32
    return %c0_i32, %c0_i32_0 : i32, i32
  }
  func.func @transform_10(%arg0: i32) -> (i32, i32) {
    %c0_i32 = arith.constant 0 : i32
    %c0_i32_0 = arith.constant 0 : i32
    %c0_i32_1 = arith.constant 0 : i32
    return %c0_i32, %c0_i32_0 : i32, i32
  }
  func.func @transform_11(%arg0: i32) -> (i32, i32) {
    %c0_i32 = arith.constant 0 : i32
    %c0_i32_0 = arith.constant 0 : i32
    return %arg0, %c0_i32 : i32, i32
  }
}

module attributes {stable_mosaic.version = 11 : i64} {
  func.func @_coi_kernel_fused(%arg0: i32, %arg1: memref<8x16xbf16, #tpu.memory_space<vmem>>, %arg2: memref<8x16xbf16, #tpu.memory_space<vmem>>, %arg3: memref<8x8xbf16, #tpu.memory_space<vmem>>, %arg4: memref<16x64xbf16, #tpu.memory_space<vmem>>, %arg5: memref<16x64xbf16, #tpu.memory_space<vmem>>, %arg6: memref<8x64xbf16, #tpu.memory_space<vmem>>, %arg7: memref<1x64xf32, #tpu.memory_space<vmem>>, %arg8: memref<64x64xbf16, #tpu.memory_space<vmem>>, %arg9: memref<1x64xf32, #tpu.memory_space<vmem>>, %arg10: memref<64x128xbf16, #tpu.memory_space<vmem>>, %arg11: memref<1x128xf32, #tpu.memory_space<vmem>>, %arg12: memref<8x128xf32, #tpu.memory_space<vmem>>) attributes {dimension_semantics = [#tpu.dimension_semantics<parallel>], iteration_bounds = array<i64: 1>, scalar_prefetch = 0 : i64, scratch_operands = 0 : i64, tpu.core_type = #tpu.core_type<tc>, window_params = [{transform_indices = @transform_0, window_bounds = array<i64: 8, 16>}, {transform_indices = @transform_1, window_bounds = array<i64: 8, 16>}, {transform_indices = @transform_2, window_bounds = array<i64: 8, 8>}, {pipeline_mode = #tpu.pipeline_mode<synchronous>, transform_indices = @transform_3, window_bounds = array<i64: 16, 64>}, {pipeline_mode = #tpu.pipeline_mode<synchronous>, transform_indices = @transform_4, window_bounds = array<i64: 16, 64>}, {pipeline_mode = #tpu.pipeline_mode<synchronous>, transform_indices = @transform_5, window_bounds = array<i64: 8, 64>}, {pipeline_mode = #tpu.pipeline_mode<synchronous>, transform_indices = @transform_6, window_bounds = array<i64: 1, 64>}, {pipeline_mode = #tpu.pipeline_mode<synchronous>, transform_indices = @transform_7, window_bounds = array<i64: 64, 64>}, {pipeline_mode = #tpu.pipeline_mode<synchronous>, transform_indices = @transform_8, window_bounds = array<i64: 1, 64>}, {pipeline_mode = #tpu.pipeline_mode<synchronous>, transform_indices = @transform_9, window_bounds = array<i64: 64, 128>}, {pipeline_mode = #tpu.pipeline_mode<synchronous>, transform_indices = @transform_10, window_bounds = array<i64: 1, 128>}, {transform_indices = @transform_11, window_bounds = array<i64: 8, 128>}]} {
    %c0 = arith.constant 0 : index
    %c0_0 = arith.constant 0 : index
    %0 = vector.load %arg1[%c0, %c0_0] : memref<8x16xbf16, #tpu.memory_space<vmem>>, vector<8x16xbf16>
    %c0_1 = arith.constant 0 : index
    %c0_2 = arith.constant 0 : index
    %1 = vector.load %arg4[%c0_1, %c0_2] : memref<16x64xbf16, #tpu.memory_space<vmem>>, vector<16x64xbf16>
    %cst = arith.constant dense<0.000000e+00> : vector<8x64xf32>
    %2 = tpu.matmul %0, %1, %cst {dimension_numbers = #tpu.dot_dimension_numbers<[1], [0], [0], [1], [0, 0, 1, 1], [], []>} : vector<8x16xbf16>, vector<16x64xbf16>, vector<8x64xf32> -> vector<8x64xf32>
    %c0_3 = arith.constant 0 : index
    %c0_4 = arith.constant 0 : index
    %3 = vector.load %arg2[%c0_3, %c0_4] : memref<8x16xbf16, #tpu.memory_space<vmem>>, vector<8x16xbf16>
    %c0_5 = arith.constant 0 : index
    %c0_6 = arith.constant 0 : index
    %4 = vector.load %arg5[%c0_5, %c0_6] : memref<16x64xbf16, #tpu.memory_space<vmem>>, vector<16x64xbf16>
    %cst_7 = arith.constant dense<0.000000e+00> : vector<8x64xf32>
    %5 = tpu.matmul %3, %4, %cst_7 {dimension_numbers = #tpu.dot_dimension_numbers<[1], [0], [0], [1], [0, 0, 1, 1], [], []>} : vector<8x16xbf16>, vector<16x64xbf16>, vector<8x64xf32> -> vector<8x64xf32>
    %6 = arith.addf %2, %5 : vector<8x64xf32>
    %c0_8 = arith.constant 0 : index
    %c0_9 = arith.constant 0 : index
    %7 = vector.load %arg3[%c0_8, %c0_9] : memref<8x8xbf16, #tpu.memory_space<vmem>>, vector<8x8xbf16>
    %c0_10 = arith.constant 0 : index
    %c0_11 = arith.constant 0 : index
    %8 = vector.load %arg6[%c0_10, %c0_11] : memref<8x64xbf16, #tpu.memory_space<vmem>>, vector<8x64xbf16>
    %cst_12 = arith.constant dense<0.000000e+00> : vector<8x64xf32>
    %9 = tpu.matmul %7, %8, %cst_12 {dimension_numbers = #tpu.dot_dimension_numbers<[1], [0], [0], [1], [0, 0, 1, 1], [], []>} : vector<8x8xbf16>, vector<8x64xbf16>, vector<8x64xf32> -> vector<8x64xf32>
    %10 = arith.addf %6, %9 : vector<8x64xf32>
    %c0_13 = arith.constant 0 : index
    %c0_14 = arith.constant 0 : index
    %11 = vector.load %arg7[%c0_13, %c0_14] : memref<1x64xf32, #tpu.memory_space<vmem>>, vector<1x64xf32>
    %12 = vector.broadcast %11 : vector<1x64xf32> to vector<8x64xf32>
    %13 = arith.addf %10, %12 : vector<8x64xf32>
    %cst_15 = arith.constant 0.000000e+00 : f32
    %14 = vector.broadcast %cst_15 : f32 to vector<8x64xf32>
    %15 = arith.maximumf %13, %14 : vector<8x64xf32>
    %16 = arith.truncf %15 : vector<8x64xf32> to vector<8x64xbf16>
    %c0_16 = arith.constant 0 : index
    %c0_17 = arith.constant 0 : index
    %17 = vector.load %arg8[%c0_16, %c0_17] : memref<64x64xbf16, #tpu.memory_space<vmem>>, vector<64x64xbf16>
    %cst_18 = arith.constant dense<0.000000e+00> : vector<8x64xf32>
    %18 = tpu.matmul %16, %17, %cst_18 {dimension_numbers = #tpu.dot_dimension_numbers<[1], [0], [0], [1], [0, 0, 1, 1], [], []>} : vector<8x64xbf16>, vector<64x64xbf16>, vector<8x64xf32> -> vector<8x64xf32>
    %c0_19 = arith.constant 0 : index
    %c0_20 = arith.constant 0 : index
    %19 = vector.load %arg9[%c0_19, %c0_20] : memref<1x64xf32, #tpu.memory_space<vmem>>, vector<1x64xf32>
    %20 = vector.broadcast %19 : vector<1x64xf32> to vector<8x64xf32>
    %21 = arith.addf %18, %20 : vector<8x64xf32>
    %cst_21 = arith.constant 0.000000e+00 : f32
    %22 = vector.broadcast %cst_21 : f32 to vector<8x64xf32>
    %23 = arith.maximumf %21, %22 : vector<8x64xf32>
    %24 = arith.truncf %23 : vector<8x64xf32> to vector<8x64xbf16>
    %c0_22 = arith.constant 0 : index
    %c0_23 = arith.constant 0 : index
    %25 = vector.load %arg10[%c0_22, %c0_23] : memref<64x128xbf16, #tpu.memory_space<vmem>>, vector<64x128xbf16>
    %cst_24 = arith.constant dense<0.000000e+00> : vector<8x128xf32>
    %26 = tpu.matmul %24, %25, %cst_24 {dimension_numbers = #tpu.dot_dimension_numbers<[1], [0], [0], [1], [0, 0, 1, 1], [], []>} : vector<8x64xbf16>, vector<64x128xbf16>, vector<8x128xf32> -> vector<8x128xf32>
    %c0_25 = arith.constant 0 : index
    %c0_26 = arith.constant 0 : index
    %27 = vector.load %arg11[%c0_25, %c0_26] : memref<1x128xf32, #tpu.memory_space<vmem>>, vector<1x128xf32>
    %28 = vector.broadcast %27 : vector<1x128xf32> to vector<8x128xf32>
    %29 = arith.addf %26, %28 : vector<8x128xf32>
    %30 = tpu.iota {dimensions = array<i32: 1>} : vector<8x128xi32>
    %c8_i32 = arith.constant 8 : i32
    %31 = vector.broadcast %c8_i32 : i32 to vector<8x128xi32>
    %32 = arith.cmpi eq, %30, %31 : vector<8x128xi32>
    %33 = math.tanh %29 : vector<8x128xf32>
    %34 = arith.select %32, %29, %33 : vector<8x128xi1>, vector<8x128xf32>
    %c0_27 = arith.constant 0 : index
    %c0_28 = arith.constant 0 : index
    %35 = vector.load %arg12[%c0_27, %c0_28] : memref<8x128xf32, #tpu.memory_space<vmem>>, vector<8x128xf32>
    tpu.vector_store %arg12[%c0_27, %c0_28], %34 {strides = array<i32>} : memref<8x128xf32, #tpu.memory_space<vmem>>, vector<8x128xf32>,
    return
  }
  func.func @transform_0(%arg0: i32) -> (i32, i32) {
    %c0_i32 = arith.constant 0 : i32
    %c0_i32_0 = arith.constant 0 : i32
    return %arg0, %c0_i32 : i32, i32
  }
  func.func @transform_1(%arg0: i32) -> (i32, i32) {
    %c0_i32 = arith.constant 0 : i32
    %c0_i32_0 = arith.constant 0 : i32
    return %arg0, %c0_i32 : i32, i32
  }
  func.func @transform_2(%arg0: i32) -> (i32, i32) {
    %c0_i32 = arith.constant 0 : i32
    %c0_i32_0 = arith.constant 0 : i32
    return %arg0, %c0_i32 : i32, i32
  }
  func.func @transform_3(%arg0: i32) -> (i32, i32) {
    %c0_i32 = arith.constant 0 : i32
    %c0_i32_0 = arith.constant 0 : i32
    %c0_i32_1 = arith.constant 0 : i32
    return %c0_i32, %c0_i32_0 : i32, i32
  }
  func.func @transform_4(%arg0: i32) -> (i32, i32) {
    %c0_i32 = arith.constant 0 : i32
    %c0_i32_0 = arith.constant 0 : i32
    %c0_i32_1 = arith.constant 0 : i32
    return %c0_i32, %c0_i32_0 : i32, i32
  }
  func.func @transform_5(%arg0: i32) -> (i32, i32) {
    %c0_i32 = arith.constant 0 : i32
    %c0_i32_0 = arith.constant 0 : i32
    %c0_i32_1 = arith.constant 0 : i32
    return %c0_i32, %c0_i32_0 : i32, i32
  }
  func.func @transform_6(%arg0: i32) -> (i32, i32) {
    %c0_i32 = arith.constant 0 : i32
    %c0_i32_0 = arith.constant 0 : i32
    %c0_i32_1 = arith.constant 0 : i32
    return %c0_i32, %c0_i32_0 : i32, i32
  }
  func.func @transform_7(%arg0: i32) -> (i32, i32) {
    %c0_i32 = arith.constant 0 : i32
    %c0_i32_0 = arith.constant 0 : i32
    %c0_i32_1 = arith.constant 0 : i32
    return %c0_i32, %c0_i32_0 : i32, i32
  }
  func.func @transform_8(%arg0: i32) -> (i32, i32) {
    %c0_i32 = arith.constant 0 : i32
    %c0_i32_0 = arith.constant 0 : i32
    %c0_i32_1 = arith.constant 0 : i32
    return %c0_i32, %c0_i32_0 : i32, i32
  }
  func.func @transform_9(%arg0: i32) -> (i32, i32) {
    %c0_i32 = arith.constant 0 : i32
    %c0_i32_0 = arith.constant 0 : i32
    %c0_i32_1 = arith.constant 0 : i32
    return %c0_i32, %c0_i32_0 : i32, i32
  }
  func.func @transform_10(%arg0: i32) -> (i32, i32) {
    %c0_i32 = arith.constant 0 : i32
    %c0_i32_0 = arith.constant 0 : i32
    %c0_i32_1 = arith.constant 0 : i32
    return %c0_i32, %c0_i32_0 : i32, i32
  }
  func.func @transform_11(%arg0: i32) -> (i32, i32) {
    %c0_i32 = arith.constant 0 : i32
    %c0_i32_0 = arith.constant 0 : i32
    return %arg0, %c0_i32 : i32, i32
  }
}

</mosaic_0001>

<bundles_post_ra>
// kernel: tpu_custom_call.1
= control target key start
LH: loop header
LB: loop body
LE: loop exit
PB: predicated region body
PF: predicated region fallthrough
CT: control target
= control target key end

     0   :  { %16 = vsyncpa [#allocation3], 0  ;;  %s1005_s0 = inlined_call_operand.hbm [shape: bf16[8,16], index: 0, kind: input, shape index: {}]   ;;  %s1006_s1 = inlined_call_operand.hbm [shape: bf16[8,16], index: 1, kind: input, shape index: {}]   ;;  %s1007_s2 = inlined_call_operand.hbm [shape: bf16[8,8], index: 2, kind: input, shape index: {}]   ;;  %s1008_s3 = inlined_call_operand.hbm [shape: bf16[16,64], index: 3, kind: input, shape index: {}]   ;;  %s1009_s4 = inlined_call_operand.hbm [shape: bf16[16,64], index: 4, kind: input, shape index: {}]   ;;  %s1010_s5 = inlined_call_operand.hbm [shape: bf16[8,64], index: 5, kind: input, shape index: {}]   ;;  %s1011_s6 = inlined_call_operand.vmem [shape: f32[1,64], index: 6, kind: input, shape index: {}]   ;;  %s1012_s7 = inlined_call_operand.hbm [shape: bf16[64,64], index: 7, kind: input, shape index: {}]   ;;  %s1013_s8 = inlined_call_operand.vmem [shape: f32[1,64], index: 8, kind: input, shape index: {}]   ;;  %s1014_s9 = inlined_call_operand.vmem [shape: bf16[64,128], index: 9, kind: input, shape index: {}]   ;;  %s1015_s10 = inlined_call_operand.vmem [shape: f32[1,128], index: 10, kind: input, shape index: {}]   ;;  %s1016_s11 = inlined_call_operand.hbm [shape: f32[8,128], index: 11, kind: output, shape index: {}]  }
   0x1   :  { %17 = vsyncpa [#allocation6], 0 }
   0x2   :  { %18 = vsyncpa [#allocation9], 0 }
   0x3   :  { %19 = vsyncpa [#allocation12], 0 }
   0x4   :  { %20 = vsyncpa [#allocation4], 0  ;;  %s770_s17 = smov [#allocation5]   ;;  %s771_s19 = smov [#allocation8]  }
   0x5   :  { %s37_s18 = sshll.u32 %s770_s17, 4  ;;  %s56_s20 = sshll.u32 %s771_s19, 4  ;;  %s38_s18 = int_to_ptr.vmem [resolvable:$true] %s37_s18  ;;  %s842_s20 = int_to_ptr.vmem [resolvable:$true] %s56_s20 }
   0x6   :  { %s584_s23 = scalar_lea.hbm %s1006_s1, 64 }
   0x7   :  { %p585_p0 = scmp.ne.s32.totalorder %s1006_s1, %s584_s23  ;;  %p588_p1 = scmp.lt.u32.totalorder %s584_s23, %s1006_s1 }
   0x9   :  { %p590_p2 = pnand %p588_p1, %p585_p0 }
   0xb   :  { %593 = shalt.err (!%p590_p2)
}
   0xc   :  { %s594_s28 = scalar_lea.vmem %s38_s18, 64  ;;  %p599_p4 = scmp.lt.s32.totalorder %s38_s18, %s38_s18 }
   0xd   :  { %p595_p3 = scmp.ne.s32.totalorder %s38_s18, %s594_s28  ;;  %p600_p5 = scmp.lt.s32.totalorder %s594_s28, %s594_s28 }
   0xf   :  { %p601_p6 = por %p600_p5, %p599_p4 }
  0x11   :  { %p602_p7 = pnand %p601_p6, %p595_p3 }
  0x13   :  { %605 = shalt.err (!%p602_p7)
}
  0x14   :  { %40 = dma.hbm_to_vmem [thread:$0]  %s1006_s1, 64, %s38_s18, [#allocation6]  }
  0x15   :  { %s606_s14 = scalar_lea.hbm %s1008_s3, 128 }
  0x16   :  { %p607_p8 = scmp.ne.s32.totalorder %s1008_s3, %s606_s14  ;;  %p610_p9 = scmp.lt.u32.totalorder %s606_s14, %s1008_s3 }
  0x18   :  { %p612_p10 = pnand %p610_p9, %p607_p8 }
  0x1a   :  { %615 = shalt.err (!%p612_p10)
}
  0x1b   :  { %s616_s21 = scalar_lea.vmem %s842_s20, 128  ;;  %p621_p12 = scmp.lt.s32.totalorder %s842_s20, %s842_s20 }
  0x1c   :  { %p617_p11 = scmp.ne.s32.totalorder %s842_s20, %s616_s21  ;;  %p622_p13 = scmp.lt.s32.totalorder %s616_s21, %s616_s21 }
  0x1e   :  { %p623_p0 = por %p622_p13, %p621_p12 }
  0x20   :  { %p624_p1 = pnand %p623_p0, %p617_p11 }
  0x22   :  { %627 = shalt.err (!%p624_p1)
}
  0x23   :  { %s772_s1 = smov 64   ;;  %s773_s18 = smov 4  }
  0x24   :  { %62 = dma.hbm_to_vmem [thread:$0]  %s1008_s3, 128, %s842_s20, [#allocation9], %s772_s1, %s772_s1, %s773_s18  }
  0x25   :  { %s774_s24 = smov [#allocation11]   ;;  %s775_s26 = smov [#allocation2]  }
  0x26   :  { %s81_s25 = sshll.u32 %s774_s24, 4  ;;  %s27_s27 = sshll.u32 %s775_s26, 4  ;;  %s82_s25 = int_to_ptr.vmem [resolvable:$true] %s81_s25  ;;  %s28_s27 = int_to_ptr.vmem [resolvable:$true] %s27_s27 }
  0x27   :  { %s628_s30 = scalar_lea.hbm %s1010_s5, 64 }
  0x28   :  { %p629_p2 = scmp.ne.s32.totalorder %s1010_s5, %s628_s30  ;;  %p632_p3 = scmp.lt.u32.totalorder %s628_s30, %s1010_s5 }
  0x2a   :  { %p634_p4 = pnand %p632_p3, %p629_p2 }
  0x2c   :  { %637 = shalt.err (!%p634_p4)
}
  0x2d   :  { %s638_s3 = scalar_lea.vmem %s82_s25, 64  ;;  %p643_p6 = scmp.lt.s32.totalorder %s82_s25, %s82_s25 }
  0x2e   :  { %p639_p5 = scmp.ne.s32.totalorder %s82_s25, %s638_s3  ;;  %p644_p7 = scmp.lt.s32.totalorder %s638_s3, %s638_s3 }
  0x30   :  { %p645_p8 = por %p644_p7, %p643_p6 }
  0x32   :  { %p646_p9 = pnand %p645_p8, %p639_p5 }
  0x34   :  { %649 = shalt.err (!%p646_p9)
}
  0x35   :  { %84 = dma.hbm_to_vmem [thread:$0]  %s1010_s5, 64, %s82_s25, [#allocation12]  }
  0x36   :  { %s650_s21 = scalar_lea.hbm %s1005_s0, 64 }
  0x37   :  { %p651_p10 = scmp.ne.s32.totalorder %s1005_s0, %s650_s21  ;;  %p654_p11 = scmp.lt.u32.totalorder %s650_s21, %s1005_s0 }
  0x39   :  { %p656_p12 = pnand %p654_p11, %p651_p10 }
  0x3b   :  { %659 = shalt.err (!%p656_p12)
}
  0x3c   :  { %s660_s28 = scalar_lea.vmem %s28_s27, 64  ;;  %p665_p0 = scmp.lt.s32.totalorder %s28_s27, %s28_s27 }
  0x3d   :  { %p661_p13 = scmp.ne.s32.totalorder %s28_s27, %s660_s28  ;;  %p666_p1 = scmp.lt.s32.totalorder %s660_s28, %s660_s28 }
  0x3f   :  { %p667_p2 = por %p666_p1, %p665_p0 }
  0x41   :  { %p668_p3 = pnand %p667_p2, %p661_p13 }
  0x43   :  { %671 = shalt.err (!%p668_p3)
}
  0x44   :  { %30 = dma.hbm_to_vmem [thread:$0]  %s1005_s0, 64, %s28_s27, [#allocation3]  }
  0x45   :  { %s776_s29 = smov [#allocation7]   ;;  %s777_s12 = smov [#allocation10]  }
  0x46   :  { %s47_s30 = sshll.u32 %s776_s29, 4  ;;  %s68_s13 = sshll.u32 %s777_s12, 4  ;;  %s48_s30 = int_to_ptr.vmem [resolvable:$true] %s47_s30  ;;  %s900_s13 = int_to_ptr.vmem [resolvable:$true] %s68_s13 }
  0x47   :  { %s672_s3 = scalar_lea.hbm %s1007_s2, 64 }
  0x48   :  { %p673_p4 = scmp.ne.s32.totalorder %s1007_s2, %s672_s3  ;;  %p676_p5 = scmp.lt.u32.totalorder %s672_s3, %s1007_s2 }
  0x4a   :  { %p678_p6 = pnand %p676_p5, %p673_p4 }
  0x4c   :  { %681 = shalt.err (!%p678_p6)
}
  0x4d   :  { %s682_s0 = scalar_lea.vmem %s48_s30, 64  ;;  %p687_p8 = scmp.lt.s32.totalorder %s48_s30, %s48_s30 }
  0x4e   :  { %p683_p7 = scmp.ne.s32.totalorder %s48_s30, %s682_s0  ;;  %p688_p9 = scmp.lt.s32.totalorder %s682_s0, %s682_s0 }
  0x50   :  { %p689_p10 = por %p688_p9, %p687_p8 }
  0x52   :  { %p690_p11 = pnand %p689_p10, %p683_p7 }
  0x54   :  { %693 = shalt.err (!%p690_p11)
}
  0x55   :  { %50 = dma.hbm_to_vmem [thread:$0]  %s1007_s2, 64, %s48_s30, [#allocation6]  }
  0x56   :  { %s694_s24 = scalar_lea.hbm %s1009_s4, 128 }
  0x57   :  { %p695_p12 = scmp.ne.s32.totalorder %s1009_s4, %s694_s24  ;;  %p698_p13 = scmp.lt.u32.totalorder %s694_s24, %s1009_s4 }
  0x59   :  { %p700_p0 = pnand %p698_p13, %p695_p12 }
  0x5b   :  { %703 = shalt.err (!%p700_p0)
}
  0x5c   :  { %s704_s29 = scalar_lea.vmem %s900_s13, 128  ;;  %p709_p2 = scmp.lt.s32.totalorder %s900_s13, %s900_s13 }
  0x5d   :  { %p705_p1 = scmp.ne.s32.totalorder %s900_s13, %s704_s29  ;;  %p710_p3 = scmp.lt.s32.totalorder %s704_s29, %s704_s29 }
  0x5f   :  { %p711_p4 = por %p710_p3, %p709_p2 }
  0x61   :  { %p712_p5 = pnand %p711_p4, %p705_p1 }
  0x63   :  { %715 = shalt.err (!%p712_p5)
}
  0x64   :  { %74 = dma.hbm_to_vmem [thread:$0]  %s1009_s4, 128, %s900_s13, [#allocation9], %s772_s1, %s772_s1, %s773_s18  }
  0x65   :  { %s778_s12 = smov [#allocation13]   ;;  %s716_s20 = scalar_lea.hbm %s1012_s7, 512 }
  0x66   :  { %s92_s14 = sshll.u32 %s778_s12, 4  ;;  %p717_p6 = scmp.ne.s32.totalorder %s1012_s7, %s716_s20  ;;  %s93_s14 = int_to_ptr.vmem [resolvable:$true] %s92_s14 }
  0x67   :  { %p720_p7 = scmp.lt.u32.totalorder %s716_s20, %s1012_s7 }
  0x69   :  { %p722_p8 = pnand %p720_p7, %p717_p6 }
  0x6b   :  { %725 = shalt.err (!%p722_p8)
}
  0x6c   :  { %s726_s27 = scalar_lea.vmem %s93_s14, 512  ;;  %p731_p10 = scmp.lt.s32.totalorder %s93_s14, %s93_s14 }
  0x6d   :  { %p727_p9 = scmp.ne.s32.totalorder %s93_s14, %s726_s27  ;;  %p732_p11 = scmp.lt.s32.totalorder %s726_s27, %s726_s27 }
  0x6f   :  { %p733_p12 = por %p732_p11, %p731_p10 }
  0x71   :  { %p734_p13 = pnand %p733_p12, %p727_p9 }
  0x73   :  { %737 = shalt.err (!%p734_p13)
}
  0x74   :  { %98 = dma.hbm_to_vmem [thread:$0]  %s1012_s7, 512, %s93_s14, [#allocation12], %s772_s1, %s772_s1, %s773_s18  }
  0x75   :  { %760 = dma.done.wait [#allocation3], 64  }
  0x76   :  { %761 = vsyncadd [#allocation3], 4294967232 }
  0x77   :  { %762 = dma.done.wait [#allocation6], 128  }
  0x78   :  { %763 = vsyncadd [#allocation6], 4294967168 }
  0x79   :  { %764 = dma.done.wait [#allocation9], 256  }
  0x7a   :  { %765 = vsyncadd [#allocation9], 4294967040 }
  0x7b   :  { %766 = dma.done.wait [#allocation12], 576  }
  0x7c   :  { %767 = vsyncadd [#allocation12], 4294966720  ;;  %v779_v0 = vmov 0.0   ;;  %vm780_vm0 = vmmov 0   ;;  %v572_v1 = vld [vmem:[#allocation10] sm:$0xff]   ;;  %vm238_vm1 = vcmask 1043456   ;;  %v460_v48 = vlaneseq }
  0x7d   :  { %518 = vmatprep.subr.bf16.mxu0 %v779_v0  ;;  %524 = vmatprep.subr.bf16.mxu1 %v779_v0  ;;  %v573_v2 = vld [vmem:[#allocation8] sm:$0xff]   ;;  %v130_v3 = vld [vmem:[#allocation5] sm:$0xf]  ;;  %vm139_vm2 = vcmask 130048   ;;  %v233_v4 = vld [vmem:[#allocation11] sm:$0xf] }
  0x7e   :  { %520 = vmatprep.mubr.msk.bf16.mxu0 %vm780_vm0, %v779_v0  ;;  %526 = vmatprep.mubr.msk.bf16.mxu1 %vm780_vm0, %v779_v0  ;;  %v127_v5 = vld [vmem:[#allocation2] sm:$0xf]  ;;  %v240_v6 = vsel %vm238_vm1, %v233_v4, 0  ;;  %v232_v7 = vld [vmem:[#allocation7] sm:$0xf]  ;;  %vm234_vm3 = vcmask 64512  }
  0x7f   :  { %519 = vmatpush3.bf16.msra.mxu0 %v572_v1  ;;  %525 = vmatpush3.bf16.msra.mxu1 %v573_v2  ;;  %v574_v8 = vld [vmem:[#allocation13] sm:$0xff]   ;;  %v575_v9 = vld [vmem:[#allocation13 + $0x8] sm:$0xff]   ;;  %v576_v10 = vld [vmem:[#allocation13 + $0x10] sm:$0xff]   ;;  %vm332_vm4 = vcmask 523264   ;;  %v461_v49 = vand.u32 127, %v460_v48 }
  0x80   :  { %530 = vmatprep.subr.bf16.mxu0 %v779_v0  ;;  %536 = vmatprep.subr.bf16.mxu1 %v779_v0  ;;  %v577_v11 = vld [vmem:[#allocation13 + $0x18] sm:$0xff]   ;;  %v578_v12 = vld [vmem:[%s1014_s9] sm:$0xff]   ;;  %v579_v13 = vld [vmem:[%s1014_s9 + $0x8] sm:$0xff]  }
  0x81   :  { %v489_v24 = vld [vmem:[%s1011_s6] ss:$0 sm:$0xff]  ;;  %v580_v32 = vld [vmem:[%s1014_s9 + $0x10] sm:$0xff]   ;;  %v581_v33 = vld [vmem:[%s1014_s9 + $0x18] sm:$0xff]   ;;  %vm462_vm5 = vcmp.eq.s32.totalorder %v461_v49, 8 }
  0x82   :  { %521 = vmatmul.mubr.msk.bf16.vlgmr.msra.gmra.mrb[0].mxu0 %vm139_vm2, %v130_v3  ;;  %527 = vmatmul.mubr.msk.bf16.vlgmr.msra.gmra.mrb[0].mxu1 %vm139_vm2, %v127_v5  ;;  %v490_v34 = vld [vmem:[%s1013_s8] ss:$0 sm:$0xff]  ;;  %s781_s8 = smov [#allocation14]  }
  0x83   :  { %531 = vmatpush3.bf16.msra.mxu0 %v240_v6  ;;  %532 = vmatprep.mubr.msk.bf16.mxu0 %vm780_vm0, %v779_v0  ;;  %v496_v42 = vld [vmem:[%s1015_s10] ss:$0 sm:$0xff]  ;;  %s472_s9 = sshll.u32 %s781_s8, 4  ;;  %s473_s9 = int_to_ptr.vmem [resolvable:$true] %s472_s9 }
  0x84   :  { %544 = vmatprep.mubr.msk.bf16.mxu1 %vm780_vm0, %v779_v0  ;;  %548 = vmatprep.subr.bf16.mxu0 %v779_v0  ;;  %s738_s30 = scalar_lea.vmem %s473_s9, 128  ;;  %p743_p1 = scmp.lt.s32.totalorder %s473_s9, %s473_s9 }
  0x85   :  { %537 = vmatpush3.bf16.msra.mxu1 %v574_v8  ;;  %p739_p0 = scmp.ne.s32.totalorder %s473_s9, %s738_s30  ;;  %p744_p2 = scmp.lt.s32.totalorder %s738_s30, %s738_s30 }
  0x86   :  { %538 = vmatprep.subr.bf16.mxu1 %v779_v0 }
  0x87   :  { %p745_p3 = por %p744_p2, %p743_p1 }
  0x89   :  { %539 = vmatpush3.bf16.msra.mxu1 %v575_v9  ;;  %p746_p4 = pnand %p745_p3, %p739_p0 }
  0x8a   :  { %533 = vmatmul.mubr.msk.bf16.vlgmr.msra.gmra.mrb[4].mxu0 %vm234_vm3, %v232_v7  ;;  %540 = vmatprep.subr.bf16.mxu1 %v779_v0 }
  0x8b   :  { %556 = vmatprep.mubr.msk.bf16.mxu0 %vm780_vm0, %v779_v0  ;;  %549 = vmatpush3.bf16.msra.mxu0 %v578_v12 }
  0x8c   :  { %550 = vmatprep.subr.bf16.mxu0 %v779_v0 }
  0x8d   :  { %541 = vmatpush3.bf16.msra.mxu1 %v576_v10 }
  0x8e   :  { %542 = vmatprep.subr.bf16.mxu1 %v779_v0 }
  0x8f   :  { %551 = vmatpush3.bf16.msra.mxu0 %v579_v13 }
  0x90   :  { %552 = vmatprep.subr.bf16.mxu0 %v779_v0 }
  0x91   :  { %543 = vmatpush3.bf16.msra.mxu1 %v577_v11 }
  0x93   :  { %553 = vmatpush3.bf16.msra.mxu0 %v580_v32 }
  0x94   :  { %554 = vmatprep.subr.bf16.mxu0 %v779_v0 }
  0x97   :  { %555 = vmatpush3.bf16.msra.mxu0 %v581_v33 }
 0x155   :  { %v177_v14 = vpop.f32.mrb[0].mxu0  ;;  %v226_v16 = vpop.f32.mrb[0].mxu1 }
 0x156   :  { %v522_v15 = vpop.f32.mrb[1].mxu0  ;;  %v227_v17 = vadd.f32 %v226_v16, %v177_v14  ;;  %v528_v19 = vpop.f32.mrb[1].mxu1 }
 0x157   :  { %v180_v18 = vpop.f32.mrb[2].mxu0  ;;  %v229_v21 = vpop.f32.mrb[2].mxu1 }
 0x158   :  { %v523_v20 = vpop.f32.mrb[3].mxu0  ;;  %v529_v22 = vpop.f32.mrb[3].mxu1 }
 0x15d   :  { %v276_v23 = vpop.f32.mrb[4].mxu0 }
 0x15e   :  { %v282_v25 = vadd.f32 %v276_v23, %v227_v17  ;;  %v534_v26 = vpop.f32.mrb[5].mxu0 }
 0x15f   :  { %v279_v27 = vpop.f32.mrb[6].mxu0 }
 0x160   :  { %v290_v28 = vadd.f32 %v489_v24, %v282_v25  ;;  %v535_v29 = vpop.f32.mrb[7].mxu0 }
 0x162   :  { %v291_v30 = vmax.f32 %v290_v28, 0.0 }
 0x164   :  { %v292_v31 = vpack.c.bf16 %v291_v30, %v291_v30 }
 0x166   :  { %545 = vmatmul.mubr.msk.bf16.vlgmr.msra.gmra.mrb[4].mxu1 %vm332_vm4, %v292_v31 }
 0x239   :  { %v370_v35 = vpop.f32.mrb[4].mxu1 }
 0x23a   :  { %v371_v36 = vadd.f32 %v490_v34, %v370_v35  ;;  %v546_v37 = vpop.f32.mrb[5].mxu1 }
 0x23b   :  { %v373_v38 = vpop.f32.mrb[6].mxu1 }
 0x23c   :  { %v376_v39 = vmax.f32 %v371_v36, 0.0  ;;  %v547_v40 = vpop.f32.mrb[7].mxu1 }
 0x23e   :  { %v377_v41 = vpack.c.bf16 %v376_v39, %v376_v39 }
 0x240   :  { %557 = vmatmul.mubr.msk.bf16.vlgmr.msra.gmra.mrb[8].mxu0 %vm332_vm4, %v377_v41 }
 0x313   :  { %v454_v43 = vpop.f32.mrb[8].mxu0 }
 0x314   :  { %v455_v44 = vadd.f32 %v496_v42, %v454_v43  ;;  %v558_v45 = vpop.f32.mrb[9].mxu0 }
 0x315   :  { %v457_v46 = vpop.f32.mrb[10].mxu0 }
 0x316   :  { %582 = vtanh.f32 %v455_v44  ;;  %v559_v47 = vpop.f32.mrb[11].mxu0 }
 0x320   :  { %v583_v50 = vpop.eup %582 }
 0x321   :  { %v464_v51 = vsel %vm462_vm5, %v455_v44, %v583_v50 }
 0x322   :  { %465 = vst [vmem:[#allocation14] sm:$0xff] %v464_v51 }
 0x323   :  { %749 = shalt.err (!%p746_p4)
}
 0x324   :  { %s750_s14 = scalar_lea.hbm %s1016_s11, 128 }
 0x325   :  { %p751_p5 = scmp.ne.s32.totalorder %s1016_s11, %s750_s14  ;;  %p754_p6 = scmp.lt.u32.totalorder %s750_s14, %s1016_s11 }
 0x327   :  { %p756_p7 = pnand %p754_p6, %p751_p5 }
 0x329   :  { %759 = shalt.err (!%p756_p7)
}
 0x32a   :  { %475 = dma.vmem_to_hbm [thread:$0]  %s473_s9, 128, %s1016_s11, [#allocation4]  }
 0x32b   :  { %768 = dma.done.wait [#allocation4], 128  }
 0x32c   :  { %769 = vsyncadd [#allocation4], 4294967168 }
 0x32d   :  { %479 = vsyncpa [#allocation3], 1 }
 0x32e   :  { %480 = vsyncpa [#allocation6], 1 }
 0x32f   :  { %481 = vsyncpa [#allocation9], 1 }
 0x330   :  { %482 = vsyncpa [#allocation12], 1 }
 0x331   :  { %483 = vsyncpa [#allocation4], 1 }

// kernel: tpu_custom_call.1
= control target key start
LH: loop header
LB: loop body
LE: loop exit
PB: predicated region body
PF: predicated region fallthrough
CT: control target
= control target key end

     0   :  { %16 = vsyncpa [#allocation3], 0  ;;  %s1005_s0 = inlined_call_operand.hbm [shape: bf16[8,16], index: 0, kind: input, shape index: {}]   ;;  %s1006_s1 = inlined_call_operand.hbm [shape: bf16[8,16], index: 1, kind: input, shape index: {}]   ;;  %s1007_s2 = inlined_call_operand.hbm [shape: bf16[8,8], index: 2, kind: input, shape index: {}]   ;;  %s1008_s3 = inlined_call_operand.hbm [shape: bf16[16,64], index: 3, kind: input, shape index: {}]   ;;  %s1009_s4 = inlined_call_operand.hbm [shape: bf16[16,64], index: 4, kind: input, shape index: {}]   ;;  %s1010_s5 = inlined_call_operand.hbm [shape: bf16[8,64], index: 5, kind: input, shape index: {}]   ;;  %s1011_s6 = inlined_call_operand.vmem [shape: f32[1,64], index: 6, kind: input, shape index: {}]   ;;  %s1012_s7 = inlined_call_operand.hbm [shape: bf16[64,64], index: 7, kind: input, shape index: {}]   ;;  %s1013_s8 = inlined_call_operand.vmem [shape: f32[1,64], index: 8, kind: input, shape index: {}]   ;;  %s1014_s9 = inlined_call_operand.vmem [shape: bf16[64,128], index: 9, kind: input, shape index: {}]   ;;  %s1015_s10 = inlined_call_operand.vmem [shape: f32[1,128], index: 10, kind: input, shape index: {}]   ;;  %s1016_s11 = inlined_call_operand.hbm [shape: f32[8,128], index: 11, kind: output, shape index: {}]  }
   0x1   :  { %17 = vsyncpa [#allocation6], 0 }
   0x2   :  { %18 = vsyncpa [#allocation9], 0 }
   0x3   :  { %19 = vsyncpa [#allocation12], 0 }
   0x4   :  { %20 = vsyncpa [#allocation4], 0  ;;  %s770_s17 = smov [#allocation5]   ;;  %s771_s19 = smov [#allocation8]  }
   0x5   :  { %s37_s18 = sshll.u32 %s770_s17, 4  ;;  %s56_s20 = sshll.u32 %s771_s19, 4  ;;  %s38_s18 = int_to_ptr.vmem [resolvable:$true] %s37_s18  ;;  %s842_s20 = int_to_ptr.vmem [resolvable:$true] %s56_s20 }
   0x6   :  { %s584_s23 = scalar_lea.hbm %s1006_s1, 64 }
   0x7   :  { %p585_p0 = scmp.ne.s32.totalorder %s1006_s1, %s584_s23  ;;  %p588_p1 = scmp.lt.u32.totalorder %s584_s23, %s1006_s1 }
   0x9   :  { %p590_p2 = pnand %p588_p1, %p585_p0 }
   0xb   :  { %593 = shalt.err (!%p590_p2)
}
   0xc   :  { %s594_s28 = scalar_lea.vmem %s38_s18, 64  ;;  %p599_p4 = scmp.lt.s32.totalorder %s38_s18, %s38_s18 }
   0xd   :  { %p595_p3 = scmp.ne.s32.totalorder %s38_s18, %s594_s28  ;;  %p600_p5 = scmp.lt.s32.totalorder %s594_s28, %s594_s28 }
   0xf   :  { %p601_p6 = por %p600_p5, %p599_p4 }
  0x11   :  { %p602_p7 = pnand %p601_p6, %p595_p3 }
  0x13   :  { %605 = shalt.err (!%p602_p7)
}
  0x14   :  { %40 = dma.hbm_to_vmem [thread:$0]  %s1006_s1, 64, %s38_s18, [#allocation6]  }
  0x15   :  { %s606_s14 = scalar_lea.hbm %s1008_s3, 128 }
  0x16   :  { %p607_p8 = scmp.ne.s32.totalorder %s1008_s3, %s606_s14  ;;  %p610_p9 = scmp.lt.u32.totalorder %s606_s14, %s1008_s3 }
  0x18   :  { %p612_p10 = pnand %p610_p9, %p607_p8 }
  0x1a   :  { %615 = shalt.err (!%p612_p10)
}
  0x1b   :  { %s616_s21 = scalar_lea.vmem %s842_s20, 128  ;;  %p621_p12 = scmp.lt.s32.totalorder %s842_s20, %s842_s20 }
  0x1c   :  { %p617_p11 = scmp.ne.s32.totalorder %s842_s20, %s616_s21  ;;  %p622_p13 = scmp.lt.s32.totalorder %s616_s21, %s616_s21 }
  0x1e   :  { %p623_p0 = por %p622_p13, %p621_p12 }
  0x20   :  { %p624_p1 = pnand %p623_p0, %p617_p11 }
  0x22   :  { %627 = shalt.err (!%p624_p1)
}
  0x23   :  { %s772_s1 = smov 64   ;;  %s773_s18 = smov 4  }
  0x24   :  { %62 = dma.hbm_to_vmem [thread:$0]  %s1008_s3, 128, %s842_s20, [#allocation9], %s772_s1, %s772_s1, %s773_s18  }
  0x25   :  { %s774_s24 = smov [#allocation11]   ;;  %s775_s26 = smov [#allocation2]  }
  0x26   :  { %s81_s25 = sshll.u32 %s774_s24, 4  ;;  %s27_s27 = sshll.u32 %s775_s26, 4  ;;  %s82_s25 = int_to_ptr.vmem [resolvable:$true] %s81_s25  ;;  %s28_s27 = int_to_ptr.vmem [resolvable:$true] %s27_s27 }
  0x27   :  { %s628_s30 = scalar_lea.hbm %s1010_s5, 64 }
  0x28   :  { %p629_p2 = scmp.ne.s32.totalorder %s1010_s5, %s628_s30  ;;  %p632_p3 = scmp.lt.u32.totalorder %s628_s30, %s1010_s5 }
  0x2a   :  { %p634_p4 = pnand %p632_p3, %p629_p2 }
  0x2c   :  { %637 = shalt.err (!%p634_p4)
}
  0x2d   :  { %s638_s3 = scalar_lea.vmem %s82_s25, 64  ;;  %p643_p6 = scmp.lt.s32.totalorder %s82_s25, %s82_s25 }
  0x2e   :  { %p639_p5 = scmp.ne.s32.totalorder %s82_s25, %s638_s3  ;;  %p644_p7 = scmp.lt.s32.totalorder %s638_s3, %s638_s3 }
  0x30   :  { %p645_p8 = por %p644_p7, %p643_p6 }
  0x32   :  { %p646_p9 = pnand %p645_p8, %p639_p5 }
  0x34   :  { %649 = shalt.err (!%p646_p9)
}
  0x35   :  { %84 = dma.hbm_to_vmem [thread:$0]  %s1010_s5, 64, %s82_s25, [#allocation12]  }
  0x36   :  { %s650_s21 = scalar_lea.hbm %s1005_s0, 64 }
  0x37   :  { %p651_p10 = scmp.ne.s32.totalorder %s1005_s0, %s650_s21  ;;  %p654_p11 = scmp.lt.u32.totalorder %s650_s21, %s1005_s0 }
  0x39   :  { %p656_p12 = pnand %p654_p11, %p651_p10 }
  0x3b   :  { %659 = shalt.err (!%p656_p12)
}
  0x3c   :  { %s660_s28 = scalar_lea.vmem %s28_s27, 64  ;;  %p665_p0 = scmp.lt.s32.totalorder %s28_s27, %s28_s27 }
  0x3d   :  { %p661_p13 = scmp.ne.s32.totalorder %s28_s27, %s660_s28  ;;  %p666_p1 = scmp.lt.s32.totalorder %s660_s28, %s660_s28 }
  0x3f   :  { %p667_p2 = por %p666_p1, %p665_p0 }
  0x41   :  { %p668_p3 = pnand %p667_p2, %p661_p13 }
  0x43   :  { %671 = shalt.err (!%p668_p3)
}
  0x44   :  { %30 = dma.hbm_to_vmem [thread:$0]  %s1005_s0, 64, %s28_s27, [#allocation3]  }
  0x45   :  { %s776_s29 = smov [#allocation7]   ;;  %s777_s12 = smov [#allocation10]  }
  0x46   :  { %s47_s30 = sshll.u32 %s776_s29, 4  ;;  %s68_s13 = sshll.u32 %s777_s12, 4  ;;  %s48_s30 = int_to_ptr.vmem [resolvable:$true] %s47_s30  ;;  %s900_s13 = int_to_ptr.vmem [resolvable:$true] %s68_s13 }
  0x47   :  { %s672_s3 = scalar_lea.hbm %s1007_s2, 64 }
  0x48   :  { %p673_p4 = scmp.ne.s32.totalorder %s1007_s2, %s672_s3  ;;  %p676_p5 = scmp.lt.u32.totalorder %s672_s3, %s1007_s2 }
  0x4a   :  { %p678_p6 = pnand %p676_p5, %p673_p4 }
  0x4c   :  { %681 = shalt.err (!%p678_p6)
}
  0x4d   :  { %s682_s0 = scalar_lea.vmem %s48_s30, 64  ;;  %p687_p8 = scmp.lt.s32.totalorder %s48_s30, %s48_s30 }
  0x4e   :  { %p683_p7 = scmp.ne.s32.totalorder %s48_s30, %s682_s0  ;;  %p688_p9 = scmp.lt.s32.totalorder %s682_s0, %s682_s0 }
  0x50   :  { %p689_p10 = por %p688_p9, %p687_p8 }
  0x52   :  { %p690_p11 = pnand %p689_p10, %p683_p7 }
  0x54   :  { %693 = shalt.err (!%p690_p11)
}
  0x55   :  { %50 = dma.hbm_to_vmem [thread:$0]  %s1007_s2, 64, %s48_s30, [#allocation6]  }
  0x56   :  { %s694_s24 = scalar_lea.hbm %s1009_s4, 128 }
  0x57   :  { %p695_p12 = scmp.ne.s32.totalorder %s1009_s4, %s694_s24  ;;  %p698_p13 = scmp.lt.u32.totalorder %s694_s24, %s1009_s4 }
  0x59   :  { %p700_p0 = pnand %p698_p13, %p695_p12 }
  0x5b   :  { %703 = shalt.err (!%p700_p0)
}
  0x5c   :  { %s704_s29 = scalar_lea.vmem %s900_s13, 128  ;;  %p709_p2 = scmp.lt.s32.totalorder %s900_s13, %s900_s13 }
  0x5d   :  { %p705_p1 = scmp.ne.s32.totalorder %s900_s13, %s704_s29  ;;  %p710_p3 = scmp.lt.s32.totalorder %s704_s29, %s704_s29 }
  0x5f   :  { %p711_p4 = por %p710_p3, %p709_p2 }
  0x61   :  { %p712_p5 = pnand %p711_p4, %p705_p1 }
  0x63   :  { %715 = shalt.err (!%p712_p5)
}
  0x64   :  { %74 = dma.hbm_to_vmem [thread:$0]  %s1009_s4, 128, %s900_s13, [#allocation9], %s772_s1, %s772_s1, %s773_s18  }
  0x65   :  { %s778_s12 = smov [#allocation13]   ;;  %s716_s20 = scalar_lea.hbm %s1012_s7, 512 }
  0x66   :  { %s92_s14 = sshll.u32 %s778_s12, 4  ;;  %p717_p6 = scmp.ne.s32.totalorder %s1012_s7, %s716_s20  ;;  %s93_s14 = int_to_ptr.vmem [resolvable:$true] %s92_s14 }
  0x67   :  { %p720_p7 = scmp.lt.u32.totalorder %s716_s20, %s1012_s7 }
  0x69   :  { %p722_p8 = pnand %p720_p7, %p717_p6 }
  0x6b   :  { %725 = shalt.err (!%p722_p8)
}
  0x6c   :  { %s726_s27 = scalar_lea.vmem %s93_s14, 512  ;;  %p731_p10 = scmp.lt.s32.totalorder %s93_s14, %s93_s14 }
  0x6d   :  { %p727_p9 = scmp.ne.s32.totalorder %s93_s14, %s726_s27  ;;  %p732_p11 = scmp.lt.s32.totalorder %s726_s27, %s726_s27 }
  0x6f   :  { %p733_p12 = por %p732_p11, %p731_p10 }
  0x71   :  { %p734_p13 = pnand %p733_p12, %p727_p9 }
  0x73   :  { %737 = shalt.err (!%p734_p13)
}
  0x74   :  { %98 = dma.hbm_to_vmem [thread:$0]  %s1012_s7, 512, %s93_s14, [#allocation12], %s772_s1, %s772_s1, %s773_s18  }
  0x75   :  { %760 = dma.done.wait [#allocation3], 64  }
  0x76   :  { %761 = vsyncadd [#allocation3], 4294967232 }
  0x77   :  { %762 = dma.done.wait [#allocation6], 128  }
  0x78   :  { %763 = vsyncadd [#allocation6], 4294967168 }
  0x79   :  { %764 = dma.done.wait [#allocation9], 256  }
  0x7a   :  { %765 = vsyncadd [#allocation9], 4294967040 }
  0x7b   :  { %766 = dma.done.wait [#allocation12], 576  }
  0x7c   :  { %767 = vsyncadd [#allocation12], 4294966720  ;;  %v779_v0 = vmov 0.0   ;;  %vm780_vm0 = vmmov 0   ;;  %v572_v1 = vld [vmem:[#allocation10] sm:$0xff]   ;;  %vm238_vm1 = vcmask 1043456   ;;  %v460_v48 = vlaneseq }
  0x7d   :  { %518 = vmatprep.subr.bf16.mxu0 %v779_v0  ;;  %524 = vmatprep.subr.bf16.mxu1 %v779_v0  ;;  %v573_v2 = vld [vmem:[#allocation8] sm:$0xff]   ;;  %v130_v3 = vld [vmem:[#allocation5] sm:$0xf]  ;;  %vm139_vm2 = vcmask 130048   ;;  %v233_v4 = vld [vmem:[#allocation11] sm:$0xf] }
  0x7e   :  { %520 = vmatprep.mubr.msk.bf16.mxu0 %vm780_vm0, %v779_v0  ;;  %526 = vmatprep.mubr.msk.bf16.mxu1 %vm780_vm0, %v779_v0  ;;  %v127_v5 = vld [vmem:[#allocation2] sm:$0xf]  ;;  %v240_v6 = vsel %vm238_vm1, %v233_v4, 0  ;;  %v232_v7 = vld [vmem:[#allocation7] sm:$0xf]  ;;  %vm234_vm3 = vcmask 64512  }
  0x7f   :  { %519 = vmatpush3.bf16.msra.mxu0 %v572_v1  ;;  %525 = vmatpush3.bf16.msra.mxu1 %v573_v2  ;;  %v574_v8 = vld [vmem:[#allocation13] sm:$0xff]   ;;  %v575_v9 = vld [vmem:[#allocation13 + $0x8] sm:$0xff]   ;;  %v576_v10 = vld [vmem:[#allocation13 + $0x10] sm:$0xff]   ;;  %vm332_vm4 = vcmask 523264   ;;  %v461_v49 = vand.u32 127, %v460_v48 }
  0x80   :  { %530 = vmatprep.subr.bf16.mxu0 %v779_v0  ;;  %536 = vmatprep.subr.bf16.mxu1 %v779_v0  ;;  %v577_v11 = vld [vmem:[#allocation13 + $0x18] sm:$0xff]   ;;  %v578_v12 = vld [vmem:[%s1014_s9] sm:$0xff]   ;;  %v579_v13 = vld [vmem:[%s1014_s9 + $0x8] sm:$0xff]  }
  0x81   :  { %v489_v24 = vld [vmem:[%s1011_s6] ss:$0 sm:$0xff]  ;;  %v580_v32 = vld [vmem:[%s1014_s9 + $0x10] sm:$0xff]   ;;  %v581_v33 = vld [vmem:[%s1014_s9 + $0x18] sm:$0xff]   ;;  %vm462_vm5 = vcmp.eq.s32.totalorder %v461_v49, 8 }
  0x82   :  { %521 = vmatmul.mubr.msk.bf16.vlgmr.msra.gmra.mrb[0].mxu0 %vm139_vm2, %v130_v3  ;;  %527 = vmatmul.mubr.msk.bf16.vlgmr.msra.gmra.mrb[0].mxu1 %vm139_vm2, %v127_v5  ;;  %v490_v34 = vld [vmem:[%s1013_s8] ss:$0 sm:$0xff]  ;;  %s781_s8 = smov [#allocation14]  }
  0x83   :  { %531 = vmatpush3.bf16.msra.mxu0 %v240_v6  ;;  %532 = vmatprep.mubr.msk.bf16.mxu0 %vm780_vm0, %v779_v0  ;;  %v496_v42 = vld [vmem:[%s1015_s10] ss:$0 sm:$0xff]  ;;  %s472_s9 = sshll.u32 %s781_s8, 4  ;;  %s473_s9 = int_to_ptr.vmem [resolvable:$true] %s472_s9 }
  0x84   :  { %544 = vmatprep.mubr.msk.bf16.mxu1 %vm780_vm0, %v779_v0  ;;  %548 = vmatprep.subr.bf16.mxu0 %v779_v0  ;;  %s738_s30 = scalar_lea.vmem %s473_s9, 128  ;;  %p743_p1 = scmp.lt.s32.totalorder %s473_s9, %s473_s9 }
  0x85   :  { %537 = vmatpush3.bf16.msra.mxu1 %v574_v8  ;;  %p739_p0 = scmp.ne.s32.totalorder %s473_s9, %s738_s30  ;;  %p744_p2 = scmp.lt.s32.totalorder %s738_s30, %s738_s30 }
  0x86   :  { %538 = vmatprep.subr.bf16.mxu1 %v779_v0 }
  0x87   :  { %p745_p3 = por %p744_p2, %p743_p1 }
  0x89   :  { %539 = vmatpush3.bf16.msra.mxu1 %v575_v9  ;;  %p746_p4 = pnand %p745_p3, %p739_p0 }
  0x8a   :  { %533 = vmatmul.mubr.msk.bf16.vlgmr.msra.gmra.mrb[4].mxu0 %vm234_vm3, %v232_v7  ;;  %540 = vmatprep.subr.bf16.mxu1 %v779_v0 }
  0x8b   :  { %556 = vmatprep.mubr.msk.bf16.mxu0 %vm780_vm0, %v779_v0  ;;  %549 = vmatpush3.bf16.msra.mxu0 %v578_v12 }
  0x8c   :  { %550 = vmatprep.subr.bf16.mxu0 %v779_v0 }
  0x8d   :  { %541 = vmatpush3.bf16.msra.mxu1 %v576_v10 }
  0x8e   :  { %542 = vmatprep.subr.bf16.mxu1 %v779_v0 }
  0x8f   :  { %551 = vmatpush3.bf16.msra.mxu0 %v579_v13 }
  0x90   :  { %552 = vmatprep.subr.bf16.mxu0 %v779_v0 }
  0x91   :  { %543 = vmatpush3.bf16.msra.mxu1 %v577_v11 }
  0x93   :  { %553 = vmatpush3.bf16.msra.mxu0 %v580_v32 }
  0x94   :  { %554 = vmatprep.subr.bf16.mxu0 %v779_v0 }
  0x97   :  { %555 = vmatpush3.bf16.msra.mxu0 %v581_v33 }
 0x155   :  { %v177_v14 = vpop.f32.mrb[0].mxu0  ;;  %v226_v16 = vpop.f32.mrb[0].mxu1 }
 0x156   :  { %v522_v15 = vpop.f32.mrb[1].mxu0  ;;  %v227_v17 = vadd.f32 %v226_v16, %v177_v14  ;;  %v528_v19 = vpop.f32.mrb[1].mxu1 }
 0x157   :  { %v180_v18 = vpop.f32.mrb[2].mxu0  ;;  %v229_v21 = vpop.f32.mrb[2].mxu1 }
 0x158   :  { %v523_v20 = vpop.f32.mrb[3].mxu0  ;;  %v529_v22 = vpop.f32.mrb[3].mxu1 }
 0x15d   :  { %v276_v23 = vpop.f32.mrb[4].mxu0 }
 0x15e   :  { %v282_v25 = vadd.f32 %v276_v23, %v227_v17  ;;  %v534_v26 = vpop.f32.mrb[5].mxu0 }
 0x15f   :  { %v279_v27 = vpop.f32.mrb[6].mxu0 }
 0x160   :  { %v290_v28 = vadd.f32 %v489_v24, %v282_v25  ;;  %v535_v29 = vpop.f32.mrb[7].mxu0 }
 0x162   :  { %v291_v30 = vmax.f32 %v290_v28, 0.0 }
 0x164   :  { %v292_v31 = vpack.c.bf16 %v291_v30, %v291_v30 }
 0x166   :  { %545 = vmatmul.mubr.msk.bf16.vlgmr.msra.gmra.mrb[4].mxu1 %vm332_vm4, %v292_v31 }
 0x239   :  { %v370_v35 = vpop.f32.mrb[4].mxu1 }
 0x23a   :  { %v371_v36 = vadd.f32 %v490_v34, %v370_v35  ;;  %v546_v37 = vpop.f32.mrb[5].mxu1 }
 0x23b   :  { %v373_v38 = vpop.f32.mrb[6].mxu1 }
 0x23c   :  { %v376_v39 = vmax.f32 %v371_v36, 0.0  ;;  %v547_v40 = vpop.f32.mrb[7].mxu1 }
 0x23e   :  { %v377_v41 = vpack.c.bf16 %v376_v39, %v376_v39 }
 0x240   :  { %557 = vmatmul.mubr.msk.bf16.vlgmr.msra.gmra.mrb[8].mxu0 %vm332_vm4, %v377_v41 }
 0x313   :  { %v454_v43 = vpop.f32.mrb[8].mxu0 }
 0x314   :  { %v455_v44 = vadd.f32 %v496_v42, %v454_v43  ;;  %v558_v45 = vpop.f32.mrb[9].mxu0 }
 0x315   :  { %v457_v46 = vpop.f32.mrb[10].mxu0 }
 0x316   :  { %582 = vtanh.f32 %v455_v44  ;;  %v559_v47 = vpop.f32.mrb[11].mxu0 }
 0x320   :  { %v583_v50 = vpop.eup %582 }
 0x321   :  { %v464_v51 = vsel %vm462_vm5, %v455_v44, %v583_v50 }
 0x322   :  { %465 = vst [vmem:[#allocation14] sm:$0xff] %v464_v51 }
 0x323   :  { %749 = shalt.err (!%p746_p4)
}
 0x324   :  { %s750_s14 = scalar_lea.hbm %s1016_s11, 128 }
 0x325   :  { %p751_p5 = scmp.ne.s32.totalorder %s1016_s11, %s750_s14  ;;  %p754_p6 = scmp.lt.u32.totalorder %s750_s14, %s1016_s11 }
 0x327   :  { %p756_p7 = pnand %p754_p6, %p751_p5 }
 0x329   :  { %759 = shalt.err (!%p756_p7)
}
 0x32a   :  { %475 = dma.vmem_to_hbm [thread:$0]  %s473_s9, 128, %s1016_s11, [#allocation4]  }
 0x32b   :  { %768 = dma.done.wait [#allocation4], 128  }
 0x32c   :  { %769 = vsyncadd [#allocation4], 4294967168 }
 0x32d   :  { %479 = vsyncpa [#allocation3], 1 }
 0x32e   :  { %480 = vsyncpa [#allocation6], 1 }
 0x32f   :  { %481 = vsyncpa [#allocation9], 1 }
 0x330   :  { %482 = vsyncpa [#allocation12], 1 }
 0x331   :  { %483 = vsyncpa [#allocation4], 1 }

</bundles_post_ra>
